<compile_context>
chip_gen: v5e
topology: v5e:2x2
jax: 0.10.0
libtpu: 0.0.40
codegen_flags: <defaults>
</compile_context>

<pallas_src>
import math

import jax
import jax.numpy as jnp
from jax.experimental import pallas as pl
from jax.experimental.pallas import tpu as pltpu


def _round_up(x, m):
    return ((x + m - 1) // m) * m


def _pad_dim(d):
    # Lane-dense pad only when it buys anything: a block dim equal to the full
    # array dim is legal under the (8,128) rule, so only pad dims that are
    # > 128 and off-multiple (real ViT K/E are already multiples of 128).
    if d % 128 == 0 or d < 128:
        return d
    return _round_up(d, 128)


def _pick_vmem_limit():
    # ~3/4 of physical VMEM, capped at 96 MiB: 96 MiB on v5e/v6e (128 MiB),
    # 48 MiB on v7x (64 MiB). Falls back to the conservative 48 MiB.
    cap = 64 * 1024 * 1024
    try:
        cap = int(pltpu.get_tpu_info().vmem_capacity_bytes)
    except Exception:
        pass
    return min((cap * 3) // 4, 96 * 1024 * 1024)


def _grid_invariant_spec(block_shape):
    """Single-buffered BlockSpec for a block that is identical at every grid step."""
    try:
        return pl.BlockSpec(block_shape, lambda i: (0, 0),
                            pipeline_mode=pl.Buffered(1))
    except TypeError:  # older jax without pipeline_mode: default buffering
        return pl.BlockSpec(block_shape, lambda i: (0, 0))


def patch_embed_kernel(patches_ref, w_ref, pos_ref, out_ref):
    # patches_ref: (tile_m, K_pad)   compute_dtype (bf16 by default)
    # w_ref:       (K_pad, E_pad)    compute_dtype (grid-invariant, Buffered(1))
    # pos_ref:     (tile_m, E_pad)   f32 = tile(pos[1:] + bias) (grid-invariant)
    # out_ref:     (tile_m, E_pad)   out_dtype (f32 default, bf16 optional)
    proj = jnp.dot(patches_ref[...], w_ref[...],
                   preferred_element_type=jnp.float32)       # MXU, f32 accumulate
    out_ref[...] = (proj + pos_ref[...]).astype(out_ref.dtype)


def make_patch_embedding(weight, bias, cls_token, pos_embed, patch_size, batch_size,
                         *, compute_dtype=jnp.bfloat16, out_dtype=jnp.float32,
                         target_rows=2048):
    """Builds a jitted forward(x) for the ViT PatchEmbedding module.

    All weight/pos preprocessing happens here, once, so the per-step hot path is
    only: patch extraction -> pallas GEMM+add -> cls concat.
    x: (B, C, H, W) NCHW float32.  Returns (B, 1+N, E) in out_dtype.
    """
    E, C, P, _ = weight.shape
    assert P == patch_size
    N = pos_embed.shape[1] - 1
    K = C * P * P
    K_pad = _pad_dim(K)
    E_pad = _pad_dim(E)

    # ---- one-time weight / pos prep (model constants; never rebuilt per call).
    w_mat = weight.reshape(E, K).T                                   # (K, E)
    w_mat = jnp.pad(w_mat, ((0, K_pad - K), (0, E_pad - E))).astype(compute_dtype)

    pos = pos_embed.reshape(1 + N, E).astype(jnp.float32)
    pos_patch = pos[1:] + bias[None, :].astype(jnp.float32)         # bias folded in
    pos_patch = jnp.pad(pos_patch, ((0, 0), (0, E_pad - E)))        # (N, E_pad) f32
    cls_row = cls_token.reshape(1, 1, E).astype(jnp.float32) + pos[0].reshape(1, 1, E)

    # ---- row tile: multiple of N (grid-invariant pos tile) and of 16 (bf16
    #      sublane pack), sized toward `target_rows`, capped so the grid keeps
    #      >= 2 steps for the nominal batch (v7x dual-TC sharding).
    m_nominal = batch_size * N
    base = N * (16 // math.gcd(N, 16))
    mult = max(1, min(max(1, target_rows // base), max(1, m_nominal // (2 * base))))
    tile_m = base * mult
    pos_tile = jnp.tile(pos_patch, (tile_m // N, 1))                 # (tile_m, E_pad)

    vmem_limit = _pick_vmem_limit()
    in_itm = jnp.dtype(compute_dtype).itemsize
    out_itm = jnp.dtype(out_dtype).itemsize

    def apply(x):
        B, Cx, H, W = x.shape
        Hp, Wp = H // P, W // P
        assert Hp * Wp == N and Cx == C
        M = B * N

        # Patch extraction + (optional) pad + cast. allow_input_fusion lets XLA
        # fuse this staging pass into the pallas input stream.
        # TODO(synk): feed NHWC upstream so this transpose becomes a reshape.
        patches = x.reshape(B, C, Hp, P, Wp, P).transpose(0, 2, 4, 1, 3, 5)
        patches = patches.reshape(M, K)
        M_pad = _round_up(M, tile_m)
        if M_pad != M or K_pad != K:
            patches = jnp.pad(patches, ((0, M_pad - M), (0, K_pad - K)))
        patches = patches.astype(compute_dtype)

        grid = (M_pad // tile_m,)
        bytes_accessed = (M_pad * K_pad * in_itm          # patch stream
                          + K_pad * E_pad * in_itm        # weight (once)
                          + tile_m * E_pad * 4            # pos tile (once)
                          + M_pad * E_pad * out_itm)      # output stream

        out = pl.pallas_call(
            patch_embed_kernel,
            out_shape=jax.ShapeDtypeStruct((M_pad, E_pad), out_dtype),
            grid_spec=pltpu.PrefetchScalarGridSpec(
                num_scalar_prefetch=0,
                grid=grid,
                in_specs=[
                    pl.BlockSpec((tile_m, K_pad), lambda i: (i, 0)),
                    _grid_invariant_spec((K_pad, E_pad)),    # weight, fetched once
                    _grid_invariant_spec((tile_m, E_pad)),   # pos+bias, fetched once
                ],
                out_specs=pl.BlockSpec((tile_m, E_pad), lambda i: (i, 0)),
            ),
            compiler_params=pltpu.CompilerParams(
                dimension_semantics=("parallel",),
                vmem_limit_bytes=vmem_limit,
                allow_input_fusion=[True, False, False],
            ),
            cost_estimate=pl.CostEstimate(
                flops=2 * M_pad * K_pad * E_pad,
                bytes_accessed=bytes_accessed,
                transcendentals=0),
        )(patches, w_mat, pos_tile)

        # Epilogue in plain XLA: drop padding, restore (B, N, E), prepend the
        # single cls+pos[0] row per batch element (keeps every kernel store
        # sublane-aligned and unmasked).
        patch_tokens = out[:M, :E].reshape(B, N, E)
        cls_rows = jnp.broadcast_to(cls_row.astype(out_dtype), (B, 1, E))
        return jnp.concatenate([cls_rows, patch_tokens], axis=1)

    return jax.jit(apply)


def reference(x, weight, bias, cls_token, pos_embed, patch_size):
    """Pure-JAX f32 reference identical to the PyTorch module's forward."""
    B, C, H, W = x.shape
    P = patch_size
    Hp, Wp = H // P, W // P
    N = Hp * Wp
    E = weight.shape[0]
    K = C * P * P
    patches = x.reshape(B, C, Hp, P, Wp, P).transpose(0, 2, 4, 1, 3, 5)
    patches = patches.reshape(B, N, K)
    proj = patches @ weight.reshape(E, K).T + bias[None, None, :]    # (B, N, E)
    cls = jnp.broadcast_to(cls_token.reshape(1, 1, E), (B, 1, E))
    seq = jnp.concatenate([cls, proj], axis=1)
    return seq + pos_embed.reshape(1, 1 + N, E)


if __name__ == "__main__":
    # Small ViT-like config: C=4 channels, 16x16 image, patch 4 -> N=16, E=32.
    B, C, H, W = 2, 4, 16, 16
    P = 4
    E = 32
    N = (H // P) * (W // P)

    key = jax.random.PRNGKey(0)
    kx, kw, kb, kc, kp = jax.random.split(key, 5)
    x = jax.random.normal(kx, (B, C, H, W), dtype=jnp.float32)
    weight = jax.random.normal(kw, (E, C, P, P), dtype=jnp.float32) * 0.05
    bias = jax.random.normal(kb, (E,), dtype=jnp.float32) * 0.05
    cls_token = jax.random.normal(kc, (1, 1, E), dtype=jnp.float32)
    pos_embed = jax.random.normal(kp, (1, 1 + N, E), dtype=jnp.float32)

    ref = reference(x, weight, bias, cls_token, pos_embed, P)

    # Default fast path: bf16 MXU inputs, f32 accumulation, f32 output.
    fwd = make_patch_embedding(weight, bias, cls_token, pos_embed, P, batch_size=B)
    out = jax.block_until_ready(fwd(x))
    assert out.shape == (B, 1 + N, E), out.shape
    err_bf16 = float(jnp.max(jnp.abs(out - ref)))
    assert err_bf16 < 5e-2, err_bf16          # bf16 matmul-input precision

    # Strict structural check: same kernel in f32.
    fwd_f32 = make_patch_embedding(weight, bias, cls_token, pos_embed, P,
                                   batch_size=B, compute_dtype=jnp.float32)
    out_f32 = jax.block_until_ready(fwd_f32(x))
    err_f32 = float(jnp.max(jnp.abs(out_f32 - ref)))
    assert err_f32 < 1e-3, err_f32

    # Mem-bound option (v6e/v7x): bf16 output halves the dominant HBM stream.
    fwd_bf16 = make_patch_embedding(weight, bias, cls_token, pos_embed, P,
                                    batch_size=B, out_dtype=jnp.bfloat16)
    out_bf16 = jax.block_until_ready(fwd_bf16(x))
    err_out_bf16 = float(jnp.max(jnp.abs(out_bf16.astype(jnp.float32) - ref)))
    assert err_out_bf16 < 1e-1, err_out_bf16

    print("KERNEL_OK")
</pallas_src>

<mosaic_0001>
module attributes {stable_mosaic.version = 11 : i64} {
  func.func @patch_embed_kernel(%arg0: i32, %arg1: memref<16x64xbf16, #tpu.memory_space<vmem>>, %arg2: memref<64x32xbf16, #tpu.memory_space<vmem>>, %arg3: memref<16x32xf32, #tpu.memory_space<vmem>>, %arg4: memref<16x32xf32, #tpu.memory_space<vmem>>) attributes {dimension_semantics = [#tpu.dimension_semantics<parallel>], iteration_bounds = array<i64: 2>, scalar_prefetch = 0 : i64, scratch_operands = 0 : i64, tpu.core_type = #tpu.core_type<tc>, window_params = [{transform_indices = @transform_0, window_bounds = array<i64: 16, 64>}, {pipeline_mode = #tpu.pipeline_mode<synchronous>, transform_indices = @transform_1, window_bounds = array<i64: 64, 32>}, {pipeline_mode = #tpu.pipeline_mode<synchronous>, transform_indices = @transform_2, window_bounds = array<i64: 16, 32>}, {transform_indices = @transform_3, window_bounds = array<i64: 16, 32>}]} {
    %c0 = arith.constant 0 : index
    %c0_0 = arith.constant 0 : index
    %0 = vector.load %arg1[%c0, %c0_0] : memref<16x64xbf16, #tpu.memory_space<vmem>>, vector<16x64xbf16>
    %c0_1 = arith.constant 0 : index
    %c0_2 = arith.constant 0 : index
    %1 = vector.load %arg2[%c0_1, %c0_2] : memref<64x32xbf16, #tpu.memory_space<vmem>>, vector<64x32xbf16>
    %cst = arith.constant dense<0.000000e+00> : vector<16x32xf32>
    %2 = tpu.matmul %0, %1, %cst {dimension_numbers = #tpu.dot_dimension_numbers<[1], [0], [0], [1], [0, 0, 1, 1], [], []>} : vector<16x64xbf16>, vector<64x32xbf16>, vector<16x32xf32> -> vector<16x32xf32>
    %c0_3 = arith.constant 0 : index
    %c0_4 = arith.constant 0 : index
    %3 = vector.load %arg3[%c0_3, %c0_4] : memref<16x32xf32, #tpu.memory_space<vmem>>, vector<16x32xf32>
    %4 = arith.addf %2, %3 : vector<16x32xf32>
    %c0_5 = arith.constant 0 : index
    %c0_6 = arith.constant 0 : index
    %5 = vector.load %arg4[%c0_5, %c0_6] : memref<16x32xf32, #tpu.memory_space<vmem>>, vector<16x32xf32>
    tpu.vector_store %arg4[%c0_5, %c0_6], %4 {strides = array<i32>} : memref<16x32xf32, #tpu.memory_space<vmem>>, vector<16x32xf32>,
    return
  }
  func.func @transform_0(%arg0: i32) -> (i32, i32) {
    %c0_i32 = arith.constant 0 : i32
    %c0_i32_0 = arith.constant 0 : i32
    return %arg0, %c0_i32 : i32, i32
  }
  func.func @transform_1(%arg0: i32) -> (i32, i32) {
    %c0_i32 = arith.constant 0 : i32
    %c0_i32_0 = arith.constant 0 : i32
    %c0_i32_1 = arith.constant 0 : i32
    return %c0_i32, %c0_i32_0 : i32, i32
  }
  func.func @transform_2(%arg0: i32) -> (i32, i32) {
    %c0_i32 = arith.constant 0 : i32
    %c0_i32_0 = arith.constant 0 : i32
    %c0_i32_1 = arith.constant 0 : i32
    return %c0_i32, %c0_i32_0 : i32, i32
  }
  func.func @transform_3(%arg0: i32) -> (i32, i32) {
    %c0_i32 = arith.constant 0 : i32
    %c0_i32_0 = arith.constant 0 : i32
    return %arg0, %c0_i32 : i32, i32
  }
}

</mosaic_0001>

<bundles_post_ra>
// kernel: apply.1
= control target key start
LH: loop header
LB: loop body
LE: loop exit
PB: predicated region body
PF: predicated region fallthrough
CT: control target
= control target key end

     0   :  { %s366_s12 = smov 0   ;;  %s401_s0 = inlined_call_operand.vmem [shape: bf16[32,64], index: 0, kind: input, shape index: {}]   ;;  %s402_s1 = inlined_call_operand.vmem [shape: bf16[64,32], index: 1, kind: input, shape index: {}]   ;;  %s403_s2 = inlined_call_operand.vmem [shape: f32[16,32], index: 2, kind: input, shape index: {}]   ;;  %s404_s3 = inlined_call_operand.vmem [shape: f32[32,32], index: 3, kind: output, shape index: {}]  }
   0x1 LB: > { %s293_s13 = sadd.s32 4294967295, %s344_s12   ;;  %p297_p0 = scmp.ge.s32.totalorder %s344_s12, 1  ;;  %s344_s12 = sphi %s366_s12, %s13_s12  }
   0x2   : > { %p138_p1 = scmp.lt.s32.totalorder %s344_s12, 3 }
   0x4   : > { %p139_p2 = pnand %p297_p0, %p138_p1 }
   0x5   : > { %s298_s16 = sshll.u32 (!%p139_p2), %s293_s13, 1 }
   0x6   : > { %142 = sbr.rel (%p139_p2) target bundleno = 164 (0xa4), region = 32  ;;  %p163_p3 = scmp.lt.s32.totalorder (!%p139_p2), %s298_s16, 3 }
   0xb   : > { %v329_v0 = vld [vmem:[%s402_s1 + $0x18] sm:$0xff]  ;;  %v328_v1 = vld [vmem:[%s402_s1 + $0x10] sm:$0xff]  ;;  %s406_s16 = smov (!%p163_p3, %s298_s16), 3  ;;  %v327_v2 = vld [vmem:[%s402_s1 + $0x8] sm:$0xff]  ;;  %vm216_vm0 = vcmask 523264   ;;  %vm234_vm1 = vcmask 261120  }
   0xc   : > { %224 = vmatpush.bf16.msra.mxu0 %v329_v0  ;;  %s299_s21 = sshll.u32 %s406_s16, 2  ;;  %v326_v3 = vld [vmem:[%s402_s1] sm:$0xff]  ;;  %s301_s27 = sshll.u32 %s406_s16, 3  ;;  %v186_v8 = vld [vmem:[%s403_s2 + $0x8] sm:$0xff] }
   0xd   : > { %s166_s26 = scalar_lea.vmem %s401_s0, %s299_s21  ;;  %v185_v5 = vld [vmem:[%s403_s2] sm:$0xff]  ;;  %s172_s5 = scalar_lea.vmem %s404_s3, %s301_s27 }
   0xe   : > { %v325_v4 = vld [vmem:[%s166_s26] sm:$0xff] }
  0x10   : > { %225 = vmatpush.bf16.msra.mxu0 %v328_v1 }
  0x14   : > { %226 = vmatpush.bf16.msra.mxu0 %v327_v2 }
  0x18   : > { %227 = vmatpush.bf16.msra.mxu0 %v326_v3 }
  0x1b   : > { %322 = vmatmul.msk.bf16.vlgmr.msra.gmra.mxu0 %vm216_vm0, %v325_v4 }
  0x98   : > { %v229_v6 = vpop.f32.mrf.mxu0 }
  0x99   : > { %v230_v7 = vadd.f32 %v229_v6, %v185_v5 }
  0x9b   : > { %235 = vst.msk [vmem:[%s172_s5] sm:$0xff] %vm234_vm1, %v230_v7 }
  0xa0   : > { %v231_v9 = vpop.f32.mrf.mxu0 }
  0xa1   : > { %v232_v10 = vadd.f32 %v231_v9, %v186_v8 }
  0xa3   : > { %236 = vst.msk [vmem:[%s172_s5 + $0x8] sm:$0xff] %vm234_vm1, %v232_v10 }
  0xa4 PF: > { %s13_s12 = sadd.s32 1, %s344_s12  }
  0xa5   : > { %p10_p4 = scmp.ge.s32.totalorder %s13_s12, 4  }
  0xa7   :  { %12 = sbr.rel (!%p10_p4) target bundleno = 1 (0x1), region = 62 }

</bundles_post_ra>
